<compile_context>
chip_gen: v7x
topology: tpu7x:2x2x1
jax: 0.10.0
libtpu: 0.0.40
codegen_flags: <defaults>
</compile_context>

<pallas_src>
import functools

import jax
import jax.numpy as jnp
from jax import lax
from jax.experimental import pallas as pl
from jax.experimental.pallas import tpu as pltpu


def _vq_kernel(z_ref, e_ref, e2_ref, q_ref, idx_ref, sse_ref):
    """One channel-major tile of rows.

    Inputs:
      z_ref   (D, TN)   encoder activations for this tile (spatial on lanes)
      e_ref   (K, D)    full codebook (resident; constant index_map)
      e2_ref  (K, 1)    precomputed ||e_k||^2 (hoisted to wrapper)

    Outputs:
      q_ref   (D, TN)     quantized activations (nearest codebook vector)
      idx_ref (1, 1, TN)  argmin index for this tile, lane-dense int32
      sse_ref (1, 1, 1)   this tile's sum((q - z)^2)   (partial sum)
    """
    z = z_ref[...]                                                 # (D, TN) f32
    e = e_ref[...]                                                 # (K, D)  f32
    e2 = e2_ref[...]                                               # (K, 1)  f32

    # argmin_k ||z_n - e_k||^2 == argmin_k (||e_k||^2 - 2 e_k.z_n); the per-column
    # ||z_n||^2 term is constant in k, so it is dropped (dist is never an output).
    ez = jnp.dot(e, z, preferred_element_type=jnp.float32)         # (K, TN)
    scores = e2 - 2.0 * ez                                         # (K, TN), lane broadcast

    kk, tn = scores.shape
    krow = lax.broadcasted_iota(jnp.int32, (kk, tn), 0)            # (K, TN)
    min_val = jnp.min(scores, axis=0, keepdims=True)               # (1, TN)
    # First (lowest-k) index attaining the minimum — matches torch.argmin tie-break.
    idx = jnp.min(jnp.where(scores == min_val, krow, jnp.int32(kk)),
                  axis=0, keepdims=True)                           # (1, TN) int32

    oh = (krow == idx).astype(jnp.float32)                         # (K, TN) one-hot (channel-major)
    # q[d, n] = sum_k e[k, d] * oh[k, n]  — codebook gather via MXU.
    q = lax.dot_general(e, oh, (((0,), (0,)), ((), ())),
                        preferred_element_type=jnp.float32)        # (D, TN)

    q_ref[...] = q                                                 # lane-dense store
    idx_ref[...] = idx[None]                                       # (1, 1, TN) lane-dense store

    diff = q - z
    sse_ref[...] = jnp.sum(diff * diff).reshape(1, 1, 1)


@functools.partial(jax.jit, static_argnames=("beta", "tile_hw"))
def vector_quantize(z, embedding, beta=0.25, tile_hw=2048):
    """Forward pass of VectorQuantize.

    z:         (B, C, H, W) float32, C == embed_dim (PyTorch NCHW convention)
    embedding: (n_embed, embed_dim) float32 codebook

    Returns (quantize[B,C,H,W], vq_loss, perplexity, embed_onehot[N,K], embed_index[N])
    """
    B, C, H, W = z.shape
    K, D = embedding.shape
    assert D == C, "embed_dim must equal channel dim"
    HW = H * W
    N = B * HW

    tile_hw = min(tile_hw, HW)
    # Guarantee >=2 tiles overall so the 'parallel' grid actually shards across
    # v7x's two TensorCores (no effect on v5e/v6e).
    if B * (HW // tile_hw) < 2 and HW % 256 == 0:
        tile_hw = HW // 2
    assert HW % tile_hw == 0, "H*W must be a multiple of tile_hw"
    assert tile_hw % 128 == 0 or tile_hw == HW, "tile_hw must be lane-aligned or full"
    grid_hw = HW // tile_hw
    n_tiles = B * grid_hw

    # Channel-major view: no transpose, just a reshape of NCHW.
    z_r = z.reshape(B, D, HW)
    # Hoisted codebook norms as a (K, 1) column (broadcasts over lanes in-kernel).
    e2 = jnp.sum(embedding * embedding, axis=1, keepdims=True)     # (K, 1)

    out_shapes = (
        jax.ShapeDtypeStruct((B, D, HW), jnp.float32),              # quantized activations (NCHW-flat)
        jax.ShapeDtypeStruct((n_tiles, 1, tile_hw), jnp.int32),     # argmin indices (lane-dense)
        jax.ShapeDtypeStruct((n_tiles, 1, 1), jnp.float32),         # per-tile SSE partials
    )

    q_r, idx_tiles, sse_part = pl.pallas_call(
        _vq_kernel,
        out_shape=out_shapes,
        grid_spec=pltpu.PrefetchScalarGridSpec(
            num_scalar_prefetch=0,
            grid=(B, grid_hw),
            in_specs=[
                pl.BlockSpec((None, D, tile_hw), lambda b, i: (b, 0, i)),   # z tile (D, TN)
                # Resident codebook + norms (constant index_map).  For multi-MiB
                # codebooks use pipeline_mode=pl.Buffered(1) (and a bf16 copy) to
                # respect v7x's 64 MiB VMEM; unnecessary at this scale.
                pl.BlockSpec((K, D), lambda b, i: (0, 0)),
                pl.BlockSpec((K, 1), lambda b, i: (0, 0)),
            ],
            out_specs=[
                pl.BlockSpec((None, D, tile_hw), lambda b, i: (b, 0, i)),
                pl.BlockSpec((1, 1, tile_hw), lambda b, i: (b * grid_hw + i, 0, 0)),
                pl.BlockSpec((1, 1, 1), lambda b, i: (b * grid_hw + i, 0, 0)),
            ],
        ),
        # All outputs are per-tile distinct blocks -> no revisited accumulators ->
        # both grid axes are truly parallel (megacore sharding on v7x).
        compiler_params=pltpu.CompilerParams(
            dimension_semantics=("parallel", "parallel")),
    )(z_r, embedding, e2)

    # Row order of idx_tiles.reshape(-1) is (b, h, w) — identical to the module's
    # z.permute(0,2,3,1).reshape(-1, D) flattening.
    embed_index = idx_tiles.reshape(-1)                             # (N,) int32
    # One-hot reconstructed lazily (identical values to F.one_hot(...).type(f32));
    # keeps the dominant (N, K) f32 stream out of the kernel's HBM writes.
    embed_onehot = jax.nn.one_hot(embed_index, K, dtype=jnp.float32)

    # vq_loss: mean((sg[q]-z)^2) + beta*mean((q-sg[z])^2) == (1+beta)*mean((q-z)^2) in value.
    sse = jnp.sum(sse_part)
    vq_loss = (1.0 + beta) * (sse / jnp.float32(N * D))

    # Straight-through estimator; already NCHW, no transpose needed.
    q_nchw = q_r.reshape(B, C, H, W)
    quantize = z + lax.stop_gradient(q_nchw - z)

    e_mean = jnp.mean(embed_onehot, axis=0)
    perplexity = jnp.exp(-jnp.sum(e_mean * jnp.log(e_mean + 1e-10)))

    return quantize, vq_loss, perplexity, embed_onehot, embed_index


if __name__ == "__main__":
    # Small shapes consistent with the module: B=2, embed_dim(C)=4, H=W=16, n_embed=16.
    n_embed, embed_dim, beta = 16, 4, 0.25
    B, H, W = 2, 16, 16

    key = jax.random.PRNGKey(0)
    kz, ke = jax.random.split(key)
    z = jax.random.normal(kz, (B, embed_dim, H, W), dtype=jnp.float32)
    # nn.Embedding weight initialized uniform(-1/n_embed, 1/n_embed), deterministic here.
    embedding = jax.random.uniform(
        ke, (n_embed, embed_dim), minval=-1.0 / n_embed, maxval=1.0 / n_embed,
        dtype=jnp.float32)

    quantize, vq_loss, perplexity, onehot, embed_index = vector_quantize(
        z, embedding, beta=beta)
    jax.block_until_ready((quantize, vq_loss, perplexity, onehot, embed_index))

    # Sanity checks against a pure-JAX reference (tie-robust formulation).
    z_flat = jnp.transpose(z, (0, 2, 3, 1)).reshape(-1, embed_dim)
    dist = (jnp.sum(z_flat ** 2, 1, keepdims=True)
            - 2.0 * z_flat @ embedding.T
            + jnp.sum(embedding ** 2, 1))
    # The chosen codebook entry must attain the minimum distance (up to rounding).
    chosen = jnp.take_along_axis(dist, embed_index[:, None], axis=1)[:, 0]
    assert bool(jnp.all(chosen <= jnp.min(dist, axis=1) + 1e-4)), "argmin not optimal"

    q_from_idx = embedding[embed_index]
    q_kernel = jnp.transpose(quantize, (0, 2, 3, 1)).reshape(-1, embed_dim)
    assert jnp.allclose(q_kernel, q_from_idx, atol=1e-5)
    assert jnp.allclose(onehot, jax.nn.one_hot(embed_index, n_embed, dtype=jnp.float32))
    loss_ref = (1.0 + beta) * jnp.mean((q_from_idx - z_flat) ** 2)
    assert jnp.allclose(vq_loss, loss_ref, atol=1e-5, rtol=1e-5)
    assert bool(jnp.isfinite(perplexity))

    print("KERNEL_OK")
</pallas_src>

<mosaic_0001>
module attributes {stable_mosaic.version = 11 : i64} {
  func.func @_vq_kernel(%arg0: i32, %arg1: i32, %arg2: memref<1x4x256xf32, #tpu.memory_space<vmem>>, %arg3: memref<16x4xf32, #tpu.memory_space<vmem>>, %arg4: memref<16x1xf32, #tpu.memory_space<vmem>>, %arg5: memref<1x4x256xf32, #tpu.memory_space<vmem>>, %arg6: memref<1x1x256xi32, #tpu.memory_space<vmem>>, %arg7: memref<1x1x1xf32, #tpu.memory_space<vmem>>) attributes {dimension_semantics = [#tpu.dimension_semantics<parallel>, #tpu.dimension_semantics<parallel>], iteration_bounds = array<i64: 2, 1>, scalar_prefetch = 0 : i64, scratch_operands = 0 : i64, tpu.core_type = #tpu.core_type<tc>, window_params = [{transform_indices = @transform_0, window_bounds = array<i64: 1, 4, 256>}, {pipeline_mode = #tpu.pipeline_mode<synchronous>, transform_indices = @transform_1, window_bounds = array<i64: 16, 4>}, {pipeline_mode = #tpu.pipeline_mode<synchronous>, transform_indices = @transform_2, window_bounds = array<i64: 16, 1>}, {transform_indices = @transform_3, window_bounds = array<i64: 1, 4, 256>}, {transform_indices = @transform_4, window_bounds = array<i64: 1, 1, 256>}, {transform_indices = @transform_5, window_bounds = array<i64: 1, 1, 1>}]} {
    %c0 = arith.constant 0 : index
    %c0_0 = arith.constant 0 : index
    %c0_1 = arith.constant 0 : index
    %0 = vector.load %arg2[%c0, %c0_0, %c0_1] : memref<1x4x256xf32, #tpu.memory_space<vmem>>, vector<1x4x256xf32>
    %1 = vector.shape_cast %0 : vector<1x4x256xf32> to vector<4x256xf32>
    %c0_2 = arith.constant 0 : index
    %c0_3 = arith.constant 0 : index
    %2 = vector.load %arg3[%c0_2, %c0_3] : memref<16x4xf32, #tpu.memory_space<vmem>>, vector<16x4xf32>
    %c0_4 = arith.constant 0 : index
    %c0_5 = arith.constant 0 : index
    %3 = vector.load %arg4[%c0_4, %c0_5] : memref<16x1xf32, #tpu.memory_space<vmem>>, vector<16x1xf32>
    %cst = arith.constant dense<0.000000e+00> : vector<16x256xf32>
    %4 = tpu.matmul %2, %1, %cst {dimension_numbers = #tpu.dot_dimension_numbers<[1], [0], [0], [1], [0, 0, 1, 1], [], []>} : vector<16x4xf32>, vector<4x256xf32>, vector<16x256xf32> -> vector<16x256xf32>
    %cst_6 = arith.constant 2.000000e+00 : f32
    %5 = vector.broadcast %cst_6 : f32 to vector<16x256xf32>
    %6 = arith.mulf %5, %4 : vector<16x256xf32>
    %7 = vector.broadcast %3 : vector<16x1xf32> to vector<16x256xf32>
    %8 = arith.subf %7, %6 : vector<16x256xf32>
    %9 = tpu.iota {dimensions = array<i32: 0>} : vector<16x256xi32>
    %cst_7 = arith.constant dense<0x7F800000> : vector<256xf32>
    %10 = vector.multi_reduction <minimumf>, %8, %cst_7 [0] : vector<16x256xf32> to vector<256xf32>
    %11 = vector.shape_cast %10 : vector<256xf32> to vector<1x256xf32>
    %12 = vector.broadcast %11 : vector<1x256xf32> to vector<16x256xf32>
    %13 = arith.cmpf oeq, %8, %12 : vector<16x256xf32>
    %c16_i32 = arith.constant 16 : i32
    %14 = vector.broadcast %c16_i32 : i32 to vector<16x256xi32>
    %15 = arith.select %13, %9, %14 : vector<16x256xi1>, vector<16x256xi32>
    %cst_8 = arith.constant dense<2147483647> : vector<256xi32>
    %16 = vector.multi_reduction <minsi>, %15, %cst_8 [0] : vector<16x256xi32> to vector<256xi32>
    %17 = vector.shape_cast %16 : vector<256xi32> to vector<1x256xi32>
    %18 = vector.broadcast %17 : vector<1x256xi32> to vector<16x256xi32>
    %19 = arith.cmpi eq, %9, %18 : vector<16x256xi32>
    %20 = arith.extui %19 : vector<16x256xi1> to vector<16x256xi32>
    %21 = arith.sitofp %20 : vector<16x256xi32> to vector<16x256xf32>
    %cst_9 = arith.constant dense<0.000000e+00> : vector<4x256xf32>
    %22 = tpu.matmul %2, %21, %cst_9 {dimension_numbers = #tpu.dot_dimension_numbers<[0], [0], [1], [1], [0, 1, 1, 1], [], []>} : vector<16x4xf32>, vector<16x256xf32>, vector<4x256xf32> -> vector<4x256xf32>
    %c0_10 = arith.constant 0 : index
    %c0_11 = arith.constant 0 : index
    %c0_12 = arith.constant 0 : index
    %23 = vector.load %arg5[%c0_10, %c0_11, %c0_12] : memref<1x4x256xf32, #tpu.memory_space<vmem>>, vector<1x4x256xf32>
    %24 = vector.shape_cast %23 : vector<1x4x256xf32> to vector<4x256xf32>
    %25 = vector.shape_cast %22 : vector<4x256xf32> to vector<1x4x256xf32>
    tpu.vector_store %arg5[%c0_10, %c0_11, %c0_12], %25 {strides = array<i32>} : memref<1x4x256xf32, #tpu.memory_space<vmem>>, vector<1x4x256xf32>,
    %26 = vector.shape_cast %17 : vector<1x256xi32> to vector<1x1x256xi32>
    %c0_13 = arith.constant 0 : index
    %c0_14 = arith.constant 0 : index
    %c0_15 = arith.constant 0 : index
    %27 = vector.load %arg6[%c0_13, %c0_14, %c0_15] : memref<1x1x256xi32, #tpu.memory_space<vmem>>, vector<1x1x256xi32>
    tpu.vector_store %arg6[%c0_13, %c0_14, %c0_15], %26 {strides = array<i32>} : memref<1x1x256xi32, #tpu.memory_space<vmem>>, vector<1x1x256xi32>,
    %28 = arith.subf %22, %1 : vector<4x256xf32>
    %29 = arith.mulf %28, %28 : vector<4x256xf32>
    %30 = vector.shape_cast %29 : vector<4x256xf32> to vector<1x4x256xf32>
    %cst_16 = arith.constant dense<0.000000e+00> : vector<1xf32>
    %31 = vector.multi_reduction <add>, %30, %cst_16 [1, 2] : vector<1x4x256xf32> to vector<1xf32>
    %32 = vector.shape_cast %31 : vector<1xf32> to vector<1x1x1xf32>
    %33 = vector.extract %32[0, 0, 0] : f32 from vector<1x1x1xf32>
    %34 = vector.broadcast %33 : f32 to vector<1x1x1xf32>
    %c0_17 = arith.constant 0 : index
    %c0_18 = arith.constant 0 : index
    %c0_19 = arith.constant 0 : index
    %35 = vector.load %arg7[%c0_17, %c0_18, %c0_19] : memref<1x1x1xf32, #tpu.memory_space<vmem>>, vector<1x1x1xf32>
    tpu.vector_store %arg7[%c0_17, %c0_18, %c0_19], %34 {strides = array<i32>} : memref<1x1x1xf32, #tpu.memory_space<vmem>>, vector<1x1x1xf32>,
    return
  }
  func.func @transform_0(%arg0: i32, %arg1: i32) -> (i32, i32, i32) {
    %c0_i32 = arith.constant 0 : i32
    %c0_i32_0 = arith.constant 0 : i32
    return %arg0, %c0_i32, %arg1 : i32, i32, i32
  }
  func.func @transform_1(%arg0: i32, %arg1: i32) -> (i32, i32) {
    %c0_i32 = arith.constant 0 : i32
    %c0_i32_0 = arith.constant 0 : i32
    %c0_i32_1 = arith.constant 0 : i32
    return %c0_i32, %c0_i32_0 : i32, i32
  }
  func.func @transform_2(%arg0: i32, %arg1: i32) -> (i32, i32) {
    %c0_i32 = arith.constant 0 : i32
    %c0_i32_0 = arith.constant 0 : i32
    %c0_i32_1 = arith.constant 0 : i32
    return %c0_i32, %c0_i32_0 : i32, i32
  }
  func.func @transform_3(%arg0: i32, %arg1: i32) -> (i32, i32, i32) {
    %c0_i32 = arith.constant 0 : i32
    %c0_i32_0 = arith.constant 0 : i32
    return %arg0, %c0_i32, %arg1 : i32, i32, i32
  }
  func.func @transform_4(%arg0: i32, %arg1: i32) -> (i32, i32, i32) {
    %c1_i32 = arith.constant 1 : i32
    %0 = arith.muli %arg0, %c1_i32 : i32
    %1 = arith.addi %0, %arg1 : i32
    %c0_i32 = arith.constant 0 : i32
    %c0_i32_0 = arith.constant 0 : i32
    %c0_i32_1 = arith.constant 0 : i32
    return %1, %c0_i32, %c0_i32_0 : i32, i32, i32
  }
  func.func @transform_5(%arg0: i32, %arg1: i32) -> (i32, i32, i32) {
    %c1_i32 = arith.constant 1 : i32
    %0 = arith.muli %arg0, %c1_i32 : i32
    %1 = arith.addi %0, %arg1 : i32
    %c0_i32 = arith.constant 0 : i32
    %c0_i32_0 = arith.constant 0 : i32
    %c0_i32_1 = arith.constant 0 : i32
    return %1, %c0_i32, %c0_i32_0 : i32, i32, i32
  }
}

</mosaic_0001>

<bundles_post_ra>
// kernel: vector_quantize.1
= control target key start
LH: loop header
LB: loop body
LE: loop exit
PB: predicated region body
PF: predicated region fallthrough
CT: control target
= control target key end

     0   :  { %s888_s18 = smov 0   ;;  %s890_s19 = smov 0   ;;  %s962_s0 = inlined_call_operand.vmem [shape: f32[2,4,256], index: 0, kind: input, shape index: {}]   ;;  %s963_s1 = inlined_call_operand.vmem [shape: f32[16,4], index: 1, kind: input, shape index: {}]   ;;  %s964_s2 = inlined_call_operand.vmem [shape: f32[16,1], index: 2, kind: input, shape index: {}]   ;;  %s965_s3 = inlined_call_operand.vmem [shape: f32[2,4,256], index: 3, kind: output, shape index: {0}]   ;;  %s966_s4 = inlined_call_operand.vmem [shape: s32[2,1,256], index: 4, kind: output, shape index: {1}]   ;;  %s967_s5 = inlined_call_operand.vmem [shape: f32[2,1,1], index: 5, kind: output, shape index: {2}]  }
   0x1   :  { %s892_s20 = smov 0  }
   0x2 LB: > { %s28_s21 = sadd.s32 1, %s848_s19  ;;  %p771_p0 = scmp.ge.s32.totalorder %s852_s20, 1  ;;  %s852_s20 = sphi %s892_s20, %s16_s20   ;;  %s848_s19 = sphi %s890_s19, %s969_s19   ;;  %s844_s18 = sphi %s888_s18, %s968_s18  }
   0x3   : > { %p30_p1 = scmp.ge.s32.totalorder %s28_s21, 2  ;;  %p217_p2 = scmp.lt.s32.totalorder %s852_s20, 3 }
   0x5   : > { %s971_s21 = smov (%p30_p1, %s28_s21), 0  ;;  %p218_p3 = pnand %p771_p0, %p217_p2 }
   0x6   : > { %p263_p4 = scmp.lt.s32.totalorder (!%p218_p3), %s844_s18, 1  ;;  %v294_v0 = vld [vmem:[%s963_s1] sm:$0xff] (!%p218_p3)  ;;  %v854_v1 = vmov (!%p218_p3), 0.0   ;;  %v855_v3 = vmov (!%p218_p3), 0   ;;  %v295_v4 = vld [vmem:[%s963_s1 + $0x8] sm:$0xff] (!%p218_p3)  ;;  %vm307_vm0 = vcmask (!%p218_p3), 1043456   ;;  %v407_v25 = vlaneseq (!%p218_p3) }
   0x7   : > { %221 = sbr.rel (%p218_p3) target bundleno = 705 (0x2c1), region = 32  ;;  %376 = vmatprep.mubr.f32.mxu0 (!%p218_p3), %v854_v1  ;;  %v296_v2 = vld [vmem:[%s964_s2] sm:$0xff] (!%p218_p3)  ;;  %466 = vxpose.xlu1.b32.start [1/2] (short) (narrow) (!%p218_p3), %v294_v0, 8  ;;  %v297_v5 = vld [vmem:[%s964_s2 + $0x8] sm:$0xff] (!%p218_p3)  ;;  %vm300_vm1 = vcmask (!%p218_p3), 31744  }
   0x8   : > { %828 = vset.pattern.permute.xlu0 (!%p218_p3), %v855_v3  ;;  %566 = vmatprep.mubr.f32.mxu1 (!%p218_p3), %v854_v1  ;;  %v408_v30 = vshrl.u32 (!%p218_p3), %v407_v25, 7  ;;  %v856_v48 = vmov (!%p218_p3), 1966171168   ;;  %v857_v62 = vmov (!%p218_p3), 1.0|1.0  }
   0x9   : > { %395 = vperm.xlu0 (!%p218_p3), %828, %v296_v2   ;;  %v580_v49 = vunpack.c.l.s4 (!%p218_p3), %v856_v48 }
   0xa   : > { %v409_v35 = vadd.s32 (!%p218_p3), 8, %v408_v30 }
   0xb   : > { %467 = vxpose.xlu1.b32.end [2/2] (short) (narrow) (!%p218_p3), %v295_v4, 8  ;;  %v581_v54 = vunpack.c.0.s8 (!%p218_p3), %v580_v49 }
   0xd   : > { %400 = vperm.xlu0 (!%p218_p3), %828, %v297_v5   ;;  %v584_v59 = vsub.s32 (!%p218_p3), %v581_v54, %v408_v30 }
   0xe   : > { %s973_s18 = smov (!%p263_p4, %s844_s18), 1 }
   0xf   : > { %s792_s26 = sshll.u32 %s973_s18, 3  ;;  %s776_s9 = sshll.u32 %s973_s18, 1 }
  0x10   : > { %s270_s8 = scalar_lea.vmem %s962_s0, %s792_s26  ;;  %s286_s12 = scalar_lea.vmem %s966_s4, %s776_s9 }
  0x11   : > { %v926_v6 = vld [vmem:[%s270_s8] sm:$0xff]  ;;  %s280_s15 = scalar_lea.vmem %s965_s3, %s792_s26  ;;  %s291_s22 = scalar_lea.vmem %s967_s5, %s973_s18 }
  0x12   : > { %v930_v7 = vcombine.high %v926_v6, %v926_v6 }
  0x14   : > { %777 = vmatprep.subr.msk.mxu0 %vm307_vm0, %v930_v7 }
  0x15   : > { %778 = vmatpush1.msk.msra.mxu0 %vm307_vm0, %v926_v6 }
  0x16   : > { %779 = vmatmul.mubr.msk.f32.vlgmr.msra.gmra.mrb[0].mxu0 %vm300_vm1, %v294_v0 }
  0x17   : > { %382 = vmatprep.mubr.f32.mxu0 %v854_v1 }
  0x1a   : > { %780 = vmatmul.mubr.msk.f32.gmra.mrb[2].mxu0 %vm300_vm1, %v295_v4 }
  0x87   : > { %v482_v0 = vpop.trf.xlu1 }
  0x88   : > { %v396_v8 = vpop.permute.xlu0 %395 }
  0x8c   : > { %v401_v16 = vpop.permute.xlu0 %400 }
  0xe9   : > { %v378_v9 = vpop.f32.mrb[0].mxu0 }
  0xea   : > { %v380_v10 = vpop.f32.mrb[1].mxu0  ;;  %v389_v11 = vmul.f32 2.0, %v378_v9 }
  0xeb   : > { %v390_v12 = vmul.f32 2.0, %v380_v10 }
  0xec   : > { %v403_v18 = vsub.f32 %v396_v8, %v389_v11 }
  0xed   : > { %v384_v13 = vpop.f32.mrb[2].mxu0  ;;  %v404_v20 = vsub.f32 %v396_v8, %v390_v12 }
  0xee   : > { %v391_v14 = vmul.f32 2.0, %v384_v13  ;;  %v386_v15 = vpop.f32.mrb[3].mxu0 }
  0xef   : > { %v392_v17 = vmul.f32 2.0, %v386_v15 }
  0xf0   : > { %v405_v19 = vsub.f32 %v401_v16, %v391_v14 }
  0xf1   : > { %v406_v21 = vsub.f32 %v401_v16, %v392_v17 }
  0xf2   : > { %v410_v22 = vmin.f32 %v403_v18, %v405_v19 }
  0xf3   : > { %v417_v23 = vmin.f32 %v404_v20, %v406_v21 }
  0xf4   : > { %v411_v24 = vrot.slane %v410_v22, 4 }
  0xf5   : > { %v418_v26 = vrot.slane %v417_v23, 4 }
  0xf6   : > { %v412_v27 = vmin.f32 %v410_v22, %v411_v24 }
  0xf7   : > { %v419_v28 = vmin.f32 %v417_v23, %v418_v26 }
  0xf8   : > { %v413_v29 = vrot.slane %v412_v27, 2 }
  0xf9   : > { %v420_v31 = vrot.slane %v419_v28, 2 }
  0xfa   : > { %v414_v32 = vmin.f32 %v412_v27, %v413_v29 }
  0xfb   : > { %v421_v33 = vmin.f32 %v419_v28, %v420_v31 }
  0xfc   : > { %v415_v34 = vrot.slane %v414_v32, 1 }
  0xfd   : > { %v422_v36 = vrot.slane %v421_v33, 1 }
  0xfe   : > { %v416_v37 = vmin.f32 %v414_v32, %v415_v34 }
  0xff   : > { %v423_v38 = vmin.f32 %v421_v33, %v422_v36 }
 0x100   : > { %vm424_vm2 = vcmp.eq.f32.partialorder %v403_v18, %v416_v37  ;;  %vm426_vm3 = vcmp.eq.f32.partialorder %v405_v19, %v416_v37 }
 0x101   : > { %v428_v39 = vsel %vm424_vm2, %v408_v30, 16  ;;  %v430_v40 = vsel %vm426_vm3, %v409_v35, 16  ;;  %vm425_vm4 = vcmp.eq.f32.partialorder %v404_v20, %v423_v38  ;;  %vm427_vm5 = vcmp.eq.f32.partialorder %v406_v21, %v423_v38 }
 0x102   : > { %vm432_vm6 = vcmp.lt.s32.totalorder %v428_v39, %v430_v40  ;;  %v429_v41 = vsel %vm425_vm4, %v408_v30, 16  ;;  %v431_v42 = vsel %vm427_vm5, %v409_v35, 16  ;;  %vm595_vm5 = vcmp.lt.s32.totalorder %v407_v25, 256 }
 0x103   : > { %v433_v43 = vsel %vm432_vm6, %v428_v39, %v430_v40  ;;  %vm443_vm7 = vcmp.lt.s32.totalorder %v429_v41, %v431_v42  ;;  %vm498_vm6 = vcmask 130048  }
 0x104   : > { %v434_v44 = vrot.slane %v433_v43, 4  ;;  %v444_v45 = vsel %vm443_vm7, %v429_v41, %v431_v42  ;;  %vm616_vm7 = vcmask 0  }
 0x105   : > { %v445_v46 = vrot.slane %v444_v45, 4 }
 0x106   : > { %vm435_vm8 = vcmp.lt.s32.totalorder %v433_v43, %v434_v44 }
 0x107   : > { %vm446_vm9 = vcmp.lt.s32.totalorder %v444_v45, %v445_v46  ;;  %v436_v47 = vsel %vm435_vm8, %v433_v43, %v434_v44 }
 0x108   : > { %v447_v50 = vsel %vm446_vm9, %v444_v45, %v445_v46  ;;  %v437_v51 = vrot.slane %v436_v47, 2 }
 0x109   : > { %v448_v52 = vrot.slane %v447_v50, 2 }
 0x10a   : > { %vm438_vm10 = vcmp.lt.s32.totalorder %v436_v47, %v437_v51 }
 0x10b   : > { %vm449_vm11 = vcmp.lt.s32.totalorder %v447_v50, %v448_v52  ;;  %v439_v53 = vsel %vm438_vm10, %v436_v47, %v437_v51 }
 0x10c   : > { %v450_v55 = vsel %vm449_vm11, %v447_v50, %v448_v52  ;;  %v440_v56 = vrot.slane %v439_v53, 1 }
 0x10d   : > { %v451_v57 = vrot.slane %v450_v55, 1 }
 0x10e   : > { %vm441_vm12 = vcmp.lt.s32.totalorder %v439_v53, %v440_v56 }
 0x10f   : > { %vm452_vm13 = vcmp.lt.s32.totalorder %v450_v55, %v451_v57  ;;  %v442_v58 = vsel %vm441_vm12, %v439_v53, %v440_v56 }
 0x110   : > { %v453_v60 = vsel %vm452_vm13, %v450_v55, %v451_v57  ;;  %vm454_vm14 = vcmp.eq.s32.totalorder %v408_v30, %v442_v58  ;;  %vm456_vm15 = vcmp.eq.s32.totalorder %v409_v35, %v442_v58 }
 0x111   : > { %vm455_vm1 = vcmp.eq.s32.totalorder %v408_v30, %v453_v60  ;;  %vm457_vm2 = vcmp.eq.s32.totalorder %v409_v35, %v453_v60  ;;  %v578_v61 = vcombine.low %v442_v58, %v453_v60  ;;  %vm796_vm4 = vmpackc.low %vm456_vm15, %vm454_vm14 }
 0x112   : > { %vm794_vm3 = vmpackc.low %vm457_vm2, %vm455_vm1 }
 0x113   : > { %795 = vmatprep.subr.msk.bf16.mxu1 %vm794_vm3, %v857_v62  ;;  %v585_v63 = vrot.slane %v578_v61, %v584_v59 }
 0x114   : > { %797 = vmatpush1.bf16.msk.msra.mxu1 %vm796_vm4, %v857_v62 }
 0x115   : > { %v592_v1 = vrot.slane %v585_v63, %v584_v59 }
 0x117   : > { %597 = vst.msk [vmem:[%s286_s12] sm:$0x3] %vm595_vm5, %v592_v1  ;;  %789 = vmatmul.mubr.msk.f32.vlgmr.msra.gmra.mrb[0].mxu1 %vm498_vm6, %v482_v0 }
 0x1ea   : > { %v568_v2 = vpop.f32.mrb[0].mxu1 }
 0x1eb   : > { %v599_v3 = vsub.f32 %v568_v2, %v926_v6  ;;  %v570_v4 = vpop.f32.mrb[1].mxu1 }
 0x1ec   : > { %v575_v5 = vcombine.low %v568_v2, %v570_v4  ;;  %v600_v8 = vsub.f32 %v570_v4, %v930_v7 }
 0x1ed   : > { %v601_v9 = vmul.f32 %v599_v3, %v599_v3 }
 0x1ee   : > { %577 = vst [vmem:[%s280_s15] sm:$0xff] %v575_v5  ;;  %v602_v10 = vmul.f32 %v600_v8, %v600_v8 }
 0x1ef   : > { %v603_v11 = vsel %vm307_vm0, %v601_v9, 0.0 }
 0x1f0   : > { %v604_v12 = vsel %vm307_vm0, %v602_v10, 0.0 }
 0x1f1   : > { %v605_v13 = vadd.f32 %v604_v12, %v603_v11 }
 0x1f3   : > { %606 = vadd.xlane.f32.xlu0 %v605_v13 }
 0x280   : > { %v607_v6 = vpop.xlane.xlu0 %606 }
 0x281   : > { %v608_v14 = vrot.slane %v607_v6, 4 }
 0x283   : > { %v609_v15 = vadd.f32 %v608_v14, %v607_v6 }
 0x285   : > { %v610_v16 = vrot.slane %v609_v15, 2 }
 0x287   : > { %v611_v17 = vadd.f32 %v610_v16, %v609_v15 }
 0x289   : > { %v612_v18 = vrot.slane %v611_v17, 1 }
 0x28b   : > { %v613_v19 = vadd.f32 %v612_v18, %v611_v17 }
 0x28d   : > { %798 = vpush %v613_v19 }
 0x2be   : > { %s799_s23 = spop %798 }
 0x2bf   : > { %v615_v7 = vstv %s799_s23 }
 0x2c0   : > { %617 = vst.msk [vmem:[%s291_s22] sm:$0x1] %vm616_vm7, %v615_v7 }
 0x2c1 PF: > { %s16_s20 = sadd.s32 1, %s852_s20   ;;  %s968_s18 = smov %s848_s19 }
 0x2c2   : > { %p13_p5 = scmp.ge.s32.totalorder %s16_s20, 4   ;;  %s969_s19 = smov %s971_s21 }
 0x2c4   :  { %15 = sbr.rel (!%p13_p5) target bundleno = 2 (0x2), region = 86 }

</bundles_post_ra>
